<compile_context>
chip_gen: v5e
topology: v5e:2x2
jax: 0.10.0
libtpu: 0.0.40
codegen_flags: <defaults>
</compile_context>

<pallas_src>
import functools

import jax
import jax.numpy as jnp
from jax.experimental import pallas as pl
from jax.experimental.pallas import tpu as pltpu


def _round_up(a: int, m: int) -> int:
    return -(-a // m) * m


def hgnn_prop_kernel(g_ref, xw_ref, u_ref, o_ref, acc_ref, *, dropout_p, scale):
    """Grid step (i, k): accumulate G[i,k] @ XW[k]; epilogue on last k.

    g_ref   : (tm, tk)     bf16 tile of the hypergraph matrix G
    xw_ref  : (tk, n_hid)  bf16 tile of the pre-projection XW = x @ W + b
    u_ref   : (tm, n_hid)  f32 uniform[0,1) randoms for dropout (row tile)
    o_ref   : (tm, n_hid)  f32 output row tile
    acc_ref : (tm, n_hid)  f32 VMEM accumulator
    """
    k = pl.program_id(1)

    @pl.when(k == 0)
    def _():
        acc_ref[...] = jnp.zeros_like(acc_ref)

    # bf16 x bf16 -> f32 accumulation on the MXU.
    acc_ref[...] += jnp.dot(
        g_ref[...], xw_ref[...], preferred_element_type=jnp.float32
    )

    @pl.when(k == pl.num_programs(1) - 1)
    def _():
        h = jnp.maximum(acc_ref[...], 0.0)  # ReLU (f32 epilogue)
        # Dropout: keep with prob (1-p), scale kept values by 1/(1-p).
        keep = u_ref[...] >= jnp.float32(dropout_p)
        o_ref[...] = jnp.where(keep, h * jnp.float32(scale), 0.0).astype(o_ref.dtype)


@functools.partial(jax.jit, static_argnames=("dropout_p", "tm", "tk"))
def hgnn_forward(x, G, W, b, dropout_key, *, dropout_p=0.5, tm=256, tk=256):
    """HGNN forward: dropout(relu(G @ (x @ W + b)), p)."""
    N, _ = x.shape
    n_hid = W.shape[1]

    # ---- Hoisted pre-projection (plain XLA, off the kernel critical path) ----
    xw = jnp.dot(x, W, preferred_element_type=jnp.float32) + b[None, :]

    # ---- Pad to tile multiples (zero padding is exact for the matmul) -------
    Np = _round_up(N, tm)   # rows of G / output
    Kp = _round_up(N, tk)   # contraction axis
    g_bf = jnp.pad(G.astype(jnp.bfloat16), ((0, Np - N), (0, Kp - N)))
    xw_bf = jnp.pad(xw.astype(jnp.bfloat16), ((0, Kp - N), (0, 0)))

    # ---- Dropout randoms (generated in XLA, consumed in-kernel) -------------
    u = jax.random.uniform(dropout_key, (Np, n_hid), dtype=jnp.float32)

    scale = 1.0 / (1.0 - dropout_p) if dropout_p < 1.0 else 0.0
    kernel = functools.partial(
        hgnn_prop_kernel, dropout_p=float(dropout_p), scale=float(scale)
    )

    out = pl.pallas_call(
        kernel,
        out_shape=jax.ShapeDtypeStruct((Np, n_hid), jnp.float32),
        grid_spec=pltpu.PrefetchScalarGridSpec(
            num_scalar_prefetch=0,
            grid=(Np // tm, Kp // tk),
            in_specs=[
                pl.BlockSpec((tm, tk), lambda i, k: (i, k)),        # G tile
                pl.BlockSpec((tk, n_hid), lambda i, k: (k, 0)),     # XW tile
                pl.BlockSpec((tm, n_hid), lambda i, k: (i, 0)),     # dropout u
            ],
            out_specs=pl.BlockSpec((tm, n_hid), lambda i, k: (i, 0)),
            scratch_shapes=[pltpu.VMEM((tm, n_hid), jnp.float32)],
        ),
        compiler_params=pltpu.CompilerParams(
            # Row tiles are independent (XW hoisted) -> parallel; contraction
            # axis carries the accumulator -> arbitrary, placed last.
            dimension_semantics=("parallel", "arbitrary"),
        ),
    )(g_bf, xw_bf, u)

    return out[:N]


if __name__ == "__main__":
    # Small deterministic problem: N=256 nodes, in_ch=32, n_hid=128 (lane-dense).
    N, IN_CH, N_HID = 256, 32, 128
    DROPOUT_P = 0.5

    key = jax.random.PRNGKey(0)
    kx, kg, kw, kb, kdrop = jax.random.split(key, 5)

    x = jax.random.normal(kx, (N, IN_CH), dtype=jnp.float32)
    G = jax.random.normal(kg, (N, N), dtype=jnp.float32) / jnp.sqrt(N)
    stdv = 1.0 / (N_HID ** 0.5)
    W = jax.random.uniform(kw, (IN_CH, N_HID), minval=-stdv, maxval=stdv,
                           dtype=jnp.float32)
    b = jax.random.uniform(kb, (N_HID,), minval=-stdv, maxval=stdv,
                           dtype=jnp.float32)

    out = hgnn_forward(x, G, W, b, kdrop, dropout_p=DROPOUT_P, tm=128, tk=128)
    out = jax.block_until_ready(out)

    # Reference with the same bf16-rounded MXU operands and f32 accumulation.
    xw_ref = x @ W + b[None, :]
    ref = jnp.maximum(
        jnp.dot(G.astype(jnp.bfloat16).astype(jnp.float32),
                xw_ref.astype(jnp.bfloat16).astype(jnp.float32)),
        0.0,
    )
    # Dropout is stochastic: kept entries must equal 2*ref, dropped entries 0.
    kept = out != 0.0
    err = jnp.max(jnp.abs(jnp.where(kept, out - (1.0 / (1.0 - DROPOUT_P)) * ref, 0.0)))

    assert out.shape == (N, N_HID)
    assert bool(jnp.isfinite(out).all())
    assert bool(kept.any())
    assert float(err) < 1e-2, f"mismatch on kept entries: {float(err)}"

    print("KERNEL_OK")
</pallas_src>

<mosaic_0001>
module attributes {stable_mosaic.version = 11 : i64} {
  func.func @hgnn_prop_kernel(%arg0: i32, %arg1: i32, %arg2: memref<128x128xbf16, #tpu.memory_space<vmem>>, %arg3: memref<128x128xbf16, #tpu.memory_space<vmem>>, %arg4: memref<128x128xf32, #tpu.memory_space<vmem>>, %arg5: memref<128x128xf32, #tpu.memory_space<vmem>>, %arg6: memref<128x128xf32, #tpu.memory_space<vmem>>) attributes {dimension_semantics = [#tpu.dimension_semantics<parallel>, #tpu.dimension_semantics<arbitrary>], iteration_bounds = array<i64: 2, 2>, scalar_prefetch = 0 : i64, scratch_operands = 1 : i64, tpu.core_type = #tpu.core_type<tc>, window_params = [{transform_indices = @transform_0, window_bounds = array<i64: 128, 128>}, {transform_indices = @transform_1, window_bounds = array<i64: 128, 128>}, {transform_indices = @transform_2, window_bounds = array<i64: 128, 128>}, {transform_indices = @transform_3, window_bounds = array<i64: 128, 128>}]} {
    %c0_i32 = arith.constant 0 : i32
    %0 = arith.cmpi eq, %arg1, %c0_i32 : i32
    %1 = arith.extui %0 : i1 to i32
    %c0_i32_0 = arith.constant 0 : i32
    %2 = arith.cmpi ne, %1, %c0_i32_0 : i32
    scf.if %2 {
      %cst_9 = arith.constant 0.000000e+00 : f32
      %12 = vector.broadcast %cst_9 : f32 to vector<128x128xf32>
      %c0_10 = arith.constant 0 : index
      %c0_11 = arith.constant 0 : index
      %13 = vector.load %arg6[%c0_10, %c0_11] : memref<128x128xf32, #tpu.memory_space<vmem>>, vector<128x128xf32>
      tpu.vector_store %arg6[%c0_10, %c0_11], %12 {strides = array<i32>} : memref<128x128xf32, #tpu.memory_space<vmem>>, vector<128x128xf32>,
    } else {
    }
    %c0 = arith.constant 0 : index
    %c0_1 = arith.constant 0 : index
    %3 = vector.load %arg6[%c0, %c0_1] : memref<128x128xf32, #tpu.memory_space<vmem>>, vector<128x128xf32>
    %c0_2 = arith.constant 0 : index
    %c0_3 = arith.constant 0 : index
    %4 = vector.load %arg2[%c0_2, %c0_3] : memref<128x128xbf16, #tpu.memory_space<vmem>>, vector<128x128xbf16>
    %c0_4 = arith.constant 0 : index
    %c0_5 = arith.constant 0 : index
    %5 = vector.load %arg3[%c0_4, %c0_5] : memref<128x128xbf16, #tpu.memory_space<vmem>>, vector<128x128xbf16>
    %cst = arith.constant dense<0.000000e+00> : vector<128x128xf32>
    %6 = tpu.matmul %4, %5, %cst {dimension_numbers = #tpu.dot_dimension_numbers<[1], [0], [0], [1], [0, 0, 1, 1], [], []>} : vector<128x128xbf16>, vector<128x128xbf16>, vector<128x128xf32> -> vector<128x128xf32>
    %7 = arith.addf %3, %6 : vector<128x128xf32>
    %c0_6 = arith.constant 0 : index
    %c0_7 = arith.constant 0 : index
    %8 = vector.load %arg6[%c0_6, %c0_7] : memref<128x128xf32, #tpu.memory_space<vmem>>, vector<128x128xf32>
    tpu.vector_store %arg6[%c0_6, %c0_7], %7 {strides = array<i32>} : memref<128x128xf32, #tpu.memory_space<vmem>>, vector<128x128xf32>,
    %c1_i32 = arith.constant 1 : i32
    %9 = arith.cmpi eq, %arg1, %c1_i32 : i32
    %10 = arith.extui %9 : i1 to i32
    %c0_i32_8 = arith.constant 0 : i32
    %11 = arith.cmpi ne, %10, %c0_i32_8 : i32
    scf.if %11 {
      %c0_9 = arith.constant 0 : index
      %c0_10 = arith.constant 0 : index
      %12 = vector.load %arg6[%c0_9, %c0_10] : memref<128x128xf32, #tpu.memory_space<vmem>>, vector<128x128xf32>
      %cst_11 = arith.constant 0.000000e+00 : f32
      %13 = vector.broadcast %cst_11 : f32 to vector<128x128xf32>
      %14 = arith.maximumf %12, %13 : vector<128x128xf32>
      %c0_12 = arith.constant 0 : index
      %c0_13 = arith.constant 0 : index
      %15 = vector.load %arg4[%c0_12, %c0_13] : memref<128x128xf32, #tpu.memory_space<vmem>>, vector<128x128xf32>
      %cst_14 = arith.constant 5.000000e-01 : f32
      %16 = vector.broadcast %cst_14 : f32 to vector<128x128xf32>
      %17 = arith.cmpf oge, %15, %16 : vector<128x128xf32>
      %cst_15 = arith.constant 2.000000e+00 : f32
      %18 = vector.broadcast %cst_15 : f32 to vector<128x128xf32>
      %19 = arith.mulf %14, %18 : vector<128x128xf32>
      %cst_16 = arith.constant 0.000000e+00 : f32
      %20 = vector.broadcast %cst_16 : f32 to vector<128x128xf32>
      %21 = arith.select %17, %19, %20 : vector<128x128xi1>, vector<128x128xf32>
      %c0_17 = arith.constant 0 : index
      %c0_18 = arith.constant 0 : index
      %22 = vector.load %arg5[%c0_17, %c0_18] : memref<128x128xf32, #tpu.memory_space<vmem>>, vector<128x128xf32>
      tpu.vector_store %arg5[%c0_17, %c0_18], %21 {strides = array<i32>} : memref<128x128xf32, #tpu.memory_space<vmem>>, vector<128x128xf32>,
    } else {
    }
    return
  }
  func.func @transform_0(%arg0: i32, %arg1: i32) -> (i32, i32) {
    %c0_i32 = arith.constant 0 : i32
    return %arg0, %arg1 : i32, i32
  }
  func.func @transform_1(%arg0: i32, %arg1: i32) -> (i32, i32) {
    %c0_i32 = arith.constant 0 : i32
    %c0_i32_0 = arith.constant 0 : i32
    return %arg1, %c0_i32 : i32, i32
  }
  func.func @transform_2(%arg0: i32, %arg1: i32) -> (i32, i32) {
    %c0_i32 = arith.constant 0 : i32
    %c0_i32_0 = arith.constant 0 : i32
    return %arg0, %c0_i32 : i32, i32
  }
  func.func @transform_3(%arg0: i32, %arg1: i32) -> (i32, i32) {
    %c0_i32 = arith.constant 0 : i32
    %c0_i32_0 = arith.constant 0 : i32
    return %arg0, %c0_i32 : i32, i32
  }
}

</mosaic_0001>

<bundles_post_ra>
// kernel: hgnn_forward.1
= control target key start
LH: loop header
LB: loop body
LE: loop exit
PB: predicated region body
PF: predicated region fallthrough
CT: control target
= control target key end

     0   :  { %s1423_s0 = inlined_call_operand.vmem [shape: bf16[256,256], index: 0, kind: input, shape index: {}]   ;;  %s1424_s1 = inlined_call_operand.vmem [shape: bf16[256,128], index: 1, kind: input, shape index: {}]   ;;  %s1425_s2 = inlined_call_operand.vmem [shape: f32[256,128], index: 2, kind: input, shape index: {}]   ;;  %s1426_s3 = inlined_call_operand.hbm [shape: f32[256,128], index: 3, kind: output, shape index: {}]  }
   0x1   :  { %1429 = sst [smem:[#allocation8_spill]] %s1423_s0 }
   0x2   :  { %8 = vsyncpa [#allocation5], 0 }
   0x3   :  { %10 = vsyncpa [#allocation5 + $0x1], 0  ;;  %s1170_s12 = smov 0   ;;  %s1172_s13 = smov 0  }
   0x4   :  { %s1174_s14 = smov 0   ;;  %s1176_s15 = smov 0  }
   0x5   :  { %s1178_s16 = smov 0   ;;  %s1180_s17 = smov 0  }
   0x6   :  { %s1182_s18 = smov 0   ;;  %s1184_s19 = smov 0  }
   0x7   :  { %s1186_s20 = smov 0   ;;  %s1188_s21 = smov 0  }
   0x8 LB: > { %s817_s22 = sadd.s32 4294967295, %s1145_s21   ;;  %s818_s23 = sadd.s32 4294967294, %s1145_s21   ;;  %s1145_s21 = sphi %s1188_s21, %s16_s21   ;;  %s1141_s20 = sphi %s1186_s20, %s1445_s20   ;;  %s1137_s19 = sphi %s1184_s19, %s1444_s19   ;;  %s1133_s18 = sphi %s1182_s18, %s1443_s18   ;;  %s1129_s17 = sphi %s1180_s17, %s1442_s17   ;;  %s1125_s16 = sphi %s1178_s16, %s1441_s16   ;;  %s1121_s15 = sphi %s1176_s15, %s1440_s15   ;;  %s1117_s14 = sphi %s1174_s14, %s1439_s14   ;;  %s1113_s13 = sphi %s1172_s13, %s1438_s13   ;;  %s1109_s12 = sphi %s1170_s12, %s1437_s12  }
   0x9   : > { %s25_s24 = sadd.s32 1, %s1137_s19  ;;  %s28_s25 = sadd.s32 1, %s1141_s20 }
   0xa   : > { %p26_p0 = scmp.ge.s32.totalorder %s25_s24, 2  ;;  %s37_s26 = sadd.s32 1, %s1125_s16 }
   0xb   : > { %p44_p1 = scmp.ne.s32.totalorder %s1125_s16, %s1121_s15  ;;  %p45_p2 = scmp.eq.s32.totalorder %s1145_s21, 0 }
   0xc   : > { %s1447_s24 = smov (%p26_p0, %s25_s24), 0  ;;  %s1449_s25 = smov (!%p26_p0, %s28_s25), %s1141_s20 }
   0xd   : > { %s33_s27 = ssub.s32 %s1137_s19, %s1447_s24  ;;  %p1233_p3 = por %p45_p2, %p44_p1 }
   0xe   : > { %p30_p4 = scmp.ge.s32.totalorder %s1449_s25, 2  ;;  %s115_s29 = sadd.s32 1, %s1117_s14 }
   0xf   : > { %p125_p5 = scmp.ne.s32.totalorder %s1117_s14, %s1113_s13  ;;  %p126_p6 = scmp.eq.s32.totalorder %s817_s22, 3 }
  0x10   : > { %s1451_s25 = smov (%p30_p4, %s1449_s25), 0  ;;  %p131_p8 = scmp.ne.s32.totalorder %s1113_s13, %s1109_s12 }
  0x11   : > { %1431 = sst [smem:[#allocation7_spill]] %s1451_s25  ;;  %p1242_p7 = por %p126_p6, %p125_p5 }
  0x12   : > { %s32_s4 = ssub.s32 %s1141_s20, %s1451_s25  ;;  %p132_p9 = scmp.eq.s32.totalorder %s818_s23, 3 }
  0x13   : > { %s34_s5 = sor.u32 %s33_s27, %s32_s4  ;;  %p113_p10 = scmp.eq.s32.totalorder %s32_s4, 0 }
  0x14   : > { %p35_p11 = scmp.eq.s32.totalorder %s34_s5, 0  ;;  %p1250_p12 = por %p132_p9, %p131_p8 }
  0x15   : > { %s1255_s7 = scalar_select %p113_p10, %s1117_s14, %s115_s29  }
  0x16   : > { %s1258_s8 = scalar_select %p35_p11, %s1125_s16, %s37_s26  }
  0x17   : > { %p820_p13 = scmp.ge.s32.totalorder %s1145_s21, 4 }
  0x19   : > { %148 = sbr.rel (%p820_p13) target bundleno = 56 (0x38), region = 16 }
  0x1e   : > { %151 = sbr.rel (!%p1233_p3) target bundleno = 56 (0x38), region = 20  ;;  %s153_s9 = sand.u32 (%p1233_p3), 1, %s1125_s16  }
  0x1f   : > { %s903_s10 = sshll.u32 (%p1233_p3), %s1141_s20, 5  ;;  %s821_s11 = sshll.u32 (%p1233_p3), %s153_s9, 6 }
  0x20   : > { %s158_s22 = sadd.s32 (%p1233_p3), %s1137_s19, %s903_s10  ;;  %s1434_s0 = sld [smem:[#allocation8_spill]] (%p1233_p3) }
  0x21   : > { %s824_s23 = sshll.u32 (%p1233_p3), %s158_s22, 2  ;;  %s155_s26 = scalar_lea.vmem (%p1233_p3), [#allocation3], %s821_s11 }
  0x26   : > { %s1269_s29 = scalar_lea.vmem %s1434_s0, %s824_s23 }
  0x27   : > { %v177_v0 = vld [vmem:[%s1269_s29] sm:$0xf]  ;;  %v179_v1 = vld [vmem:[%s1269_s29 + $0x8] sm:$0xf]  ;;  %v181_v2 = vld [vmem:[%s1269_s29 + $0x10] sm:$0xf] }
  0x28   : > { %178 = vst [vmem:[%s155_s26] sm:$0xf] %v177_v0  ;;  %v183_v3 = vld [vmem:[%s1269_s29 + $0x18] sm:$0xf]  ;;  %v185_v4 = vld [vmem:[%s1269_s29 + $0x20] sm:$0xf] }
  0x29   : > { %180 = vst [vmem:[%s155_s26 + $0x4] sm:$0xf] %v179_v1  ;;  %v187_v5 = vld [vmem:[%s1269_s29 + $0x28] sm:$0xf]  ;;  %v189_v6 = vld [vmem:[%s1269_s29 + $0x30] sm:$0xf] }
  0x2a   : > { %182 = vst [vmem:[%s155_s26 + $0x8] sm:$0xf] %v181_v2  ;;  %v191_v7 = vld [vmem:[%s1269_s29 + $0x38] sm:$0xf]  ;;  %v193_v8 = vld [vmem:[%s1269_s29 + $0x40] sm:$0xf] }
  0x2b   : > { %184 = vst [vmem:[%s155_s26 + $0xc] sm:$0xf] %v183_v3  ;;  %v195_v9 = vld [vmem:[%s1269_s29 + $0x48] sm:$0xf]  ;;  %v197_v10 = vld [vmem:[%s1269_s29 + $0x50] sm:$0xf] }
  0x2c   : > { %186 = vst [vmem:[%s155_s26 + $0x10] sm:$0xf] %v185_v4  ;;  %v199_v11 = vld [vmem:[%s1269_s29 + $0x58] sm:$0xf]  ;;  %v201_v12 = vld [vmem:[%s1269_s29 + $0x60] sm:$0xf] }
  0x2d   : > { %188 = vst [vmem:[%s155_s26 + $0x14] sm:$0xf] %v187_v5  ;;  %v203_v13 = vld [vmem:[%s1269_s29 + $0x68] sm:$0xf]  ;;  %v205_v14 = vld [vmem:[%s1269_s29 + $0x70] sm:$0xf] }
  0x2e   : > { %190 = vst [vmem:[%s155_s26 + $0x18] sm:$0xf] %v189_v6  ;;  %v207_v15 = vld [vmem:[%s1269_s29 + $0x78] sm:$0xf] }
  0x2f   : > { %192 = vst [vmem:[%s155_s26 + $0x1c] sm:$0xf] %v191_v7 }
  0x30   : > { %194 = vst [vmem:[%s155_s26 + $0x20] sm:$0xf] %v193_v8 }
  0x31   : > { %196 = vst [vmem:[%s155_s26 + $0x24] sm:$0xf] %v195_v9 }
  0x32   : > { %198 = vst [vmem:[%s155_s26 + $0x28] sm:$0xf] %v197_v10 }
  0x33   : > { %200 = vst [vmem:[%s155_s26 + $0x2c] sm:$0xf] %v199_v11 }
  0x34   : > { %202 = vst [vmem:[%s155_s26 + $0x30] sm:$0xf] %v201_v12 }
  0x35   : > { %204 = vst [vmem:[%s155_s26 + $0x34] sm:$0xf] %v203_v13 }
  0x36   : > { %206 = vst [vmem:[%s155_s26 + $0x38] sm:$0xf] %v205_v14 }
  0x37   : > { %208 = vst [vmem:[%s155_s26 + $0x3c] sm:$0xf] %v207_v15 }
  0x38 PF: > { %p825_p0 = scmp.ge.s32.totalorder %s1145_s21, 1  ;;  %p281_p1 = scmp.lt.s32.totalorder %s1145_s21, 5 }
  0x3a   : > { %p282_p2 = pnand %p825_p0, %p281_p1 }
  0x3b   : > { %s288_s28 = sand.u32 (!%p282_p2), 1, %s1121_s15   ;;  %s1428_s5 = sand.u32 (!%p282_p2), 1, %s1113_s13  }
  0x3c   : > { %285 = sbr.rel (%p282_p2) target bundleno = 321 (0x141), region = 69  ;;  %s826_s9 = sshll.u32 (!%p282_p2), %s288_s28, 6 }
  0x3d   : > { %s827_s10 = sshll.u32 (!%p282_p2), %s1428_s5, 7  ;;  %s828_s11 = sshll.u32 (!%p282_p2), %s1129_s17, 4 }
  0x3e   : > { %s830_s22 = sshll.u32 (!%p282_p2), %s1133_s18, 4  ;;  %p323_p3 = scmp.lt.s32.totalorder (!%p282_p2), %s828_s11, 31 }
  0x3f   : > { %p329_p4 = scmp.lt.s32.totalorder (!%p282_p2), %s830_s22, 31  ;;  %s1305_s28 = scalar_lea.vmem (!%p282_p2), [#allocation3], %s826_s9 }
  0x40   : > { %s1307_s5 = scalar_lea.vmem (!%p282_p2), [#allocation4], %s827_s10  ;;  %p832_p5 = scmp.ne.s32.totalorder (!%p282_p2), %s1129_s17, 0 }
  0x41   : > { %s1453_s11 = smov (!%p323_p3, %s828_s11), 31  ;;  %s1455_s22 = smov (!%p329_p4, %s830_s22), 31 }
  0x42   : > { %s829_s23 = sshll.u32 %s1453_s11, 2  ;;  %s831_s26 = sshll.u32 %s1455_s22, 3 }
  0x43   : > { %s1298_s29 = scalar_lea.vmem %s1424_s1, %s829_s23  ;;  %s1303_s15 = scalar_lea.vmem %s1425_s2, %s831_s26 }
  0x44   : > { %338 = sbr.rel (%p832_p5) target bundleno = 90 (0x5a), region = 77 }
  0x49   : > { %v1147_v16 = vmov 0.0  }
  0x4a   : > { %339 = vst [vmem:[#allocation2 + $0x30] sm:$0xff] %v1147_v16 }
  0x4b   : > { %340 = vst [vmem:[#allocation2] sm:$0xff] %v1147_v16 }
  0x4c   : > { %341 = vst [vmem:[#allocation2 + $0x58] sm:$0xff] %v1147_v16 }
  0x4d   : > { %342 = vst [vmem:[#allocation2 + $0x18] sm:$0xff] %v1147_v16 }
  0x4e   : > { %343 = vst [vmem:[#allocation2 + $0x50] sm:$0xff] %v1147_v16 }
  0x4f   : > { %344 = vst [vmem:[#allocation2 + $0x68] sm:$0xff] %v1147_v16 }
  0x50   : > { %345 = vst [vmem:[#allocation2 + $0x8] sm:$0xff] %v1147_v16 }
  0x51   : > { %346 = vst [vmem:[#allocation2 + $0x48] sm:$0xff] %v1147_v16 }
  0x52   : > { %347 = vst [vmem:[#allocation2 + $0x40] sm:$0xff] %v1147_v16 }
  0x53   : > { %348 = vst [vmem:[#allocation2 + $0x20] sm:$0xff] %v1147_v16 }
  0x54   : > { %349 = vst [vmem:[#allocation2 + $0x10] sm:$0xff] %v1147_v16 }
  0x55   : > { %350 = vst [vmem:[#allocation2 + $0x38] sm:$0xff] %v1147_v16 }
  0x56   : > { %351 = vst [vmem:[#allocation2 + $0x60] sm:$0xff] %v1147_v16 }
  0x57   : > { %352 = vst [vmem:[#allocation2 + $0x70] sm:$0xff] %v1147_v16 }
  0x58   : > { %353 = vst [vmem:[#allocation2 + $0x78] sm:$0xff] %v1147_v16 }
  0x59   : > { %354 = vst [vmem:[#allocation2 + $0x28] sm:$0xff] %v1147_v16 }
  0x5a PF: > { %v919_v17 = vld [vmem:[%s1298_s29 + $0x38] sm:$0xff]  ;;  %v918_v18 = vld [vmem:[%s1298_s29 + $0x30] sm:$0xff]  ;;  %v917_v19 = vld [vmem:[%s1298_s29 + $0x28] sm:$0xff]  ;;  %p897_p6 = scmp.ne.s32.totalorder %s1129_s17, 1 }
  0x5b   : > { %499 = vmatpush.bf16.msra.mxu0 %v919_v17  ;;  %921 = vmatpush.bf16.msra.mxu1 %v919_v17  ;;  %v916_v20 = vld [vmem:[%s1298_s29 + $0x20] sm:$0xff]  ;;  %v915_v21 = vld [vmem:[%s1298_s29 + $0x18] sm:$0xff]  ;;  %v914_v22 = vld [vmem:[%s1298_s29 + $0x10] sm:$0xff] }
  0x5c   : > { %922 = vmatpush.bf16.msra.mxu2 %v919_v17  ;;  %923 = vmatpush.bf16.msra.mxu3 %v919_v17  ;;  %v913_v23 = vld [vmem:[%s1298_s29 + $0x8] sm:$0xff]  ;;  %v912_v24 = vld [vmem:[%s1298_s29] sm:$0xff]  ;;  %v906_v26 = vld [vmem:[%s1305_s28 + $0x10] sm:$0xff] }
  0x5d   : > { %v904_v25 = vld [vmem:[%s1305_s28] sm:$0xff]  ;;  %v910_v28 = vld [vmem:[%s1305_s28 + $0x30] sm:$0xff]  ;;  %v905_v29 = vld [vmem:[%s1305_s28 + $0x8] sm:$0xff] }
  0x5e   : > { %v908_v27 = vld [vmem:[%s1305_s28 + $0x20] sm:$0xff]  ;;  %v907_v30 = vld [vmem:[%s1305_s28 + $0x18] sm:$0xff]  ;;  %v909_v31 = vld [vmem:[%s1305_s28 + $0x28] sm:$0xff] }
  0x5f   : > { %500 = vmatpush.bf16.msra.mxu0 %v918_v18  ;;  %924 = vmatpush.bf16.msra.mxu1 %v918_v18  ;;  %v911_v32 = vld [vmem:[%s1305_s28 + $0x38] sm:$0xff]  ;;  %v355_v33 = vld [vmem:[#allocation2 + $0x30] sm:$0xff]  ;;  %v363_v39 = vld [vmem:[#allocation2 + $0x40] sm:$0xff] }
  0x60   : > { %925 = vmatpush.bf16.msra.mxu2 %v918_v18  ;;  %926 = vmatpush.bf16.msra.mxu3 %v918_v18  ;;  %v359_v34 = vld [vmem:[#allocation2 + $0x50] sm:$0xff]  ;;  %v367_v40 = vld [vmem:[#allocation2 + $0x60] sm:$0xff]  ;;  %v360_v42 = vld [vmem:[#allocation2 + $0x68] sm:$0xff] }
  0x61   : > { %v356_v41 = vld [vmem:[#allocation2] sm:$0xff]  ;;  %v368_v52 = vld [vmem:[#allocation2 + $0x70] sm:$0xff]  ;;  %v357_v53 = vld [vmem:[#allocation2 + $0x58] sm:$0xff] }
  0x62   : > { %v364_v51 = vld [vmem:[#allocation2 + $0x20] sm:$0xff]  ;;  %v361_v54 = vld [vmem:[#allocation2 + $0x8] sm:$0xff]  ;;  %v365_v63 = vld [vmem:[#allocation2 + $0x10] sm:$0xff] }
  0x63   : > { %501 = vmatpush.bf16.msra.mxu0 %v917_v19  ;;  %927 = vmatpush.bf16.msra.mxu1 %v917_v19  ;;  %v369_v0 = vld [vmem:[#allocation2 + $0x78] sm:$0xff]  ;;  %v362_v2 = vld [vmem:[#allocation2 + $0x48] sm:$0xff] }
  0x64   : > { %928 = vmatpush.bf16.msra.mxu2 %v917_v19  ;;  %929 = vmatpush.bf16.msra.mxu3 %v917_v19  ;;  %v358_v1 = vld [vmem:[#allocation2 + $0x18] sm:$0xff]  ;;  %v370_v12 = vld [vmem:[#allocation2 + $0x28] sm:$0xff] }
  0x65   : > { %v366_v11 = vld [vmem:[#allocation2 + $0x38] sm:$0xff] }
  0x67   : > { %502 = vmatpush.bf16.msra.mxu0 %v916_v20  ;;  %930 = vmatpush.bf16.msra.mxu1 %v916_v20 }
  0x68   : > { %931 = vmatpush.bf16.msra.mxu2 %v916_v20  ;;  %932 = vmatpush.bf16.msra.mxu3 %v916_v20 }
  0x6b   : > { %503 = vmatpush.bf16.msra.mxu0 %v915_v21  ;;  %933 = vmatpush.bf16.msra.mxu1 %v915_v21 }
  0x6c   : > { %934 = vmatpush.bf16.msra.mxu2 %v915_v21  ;;  %935 = vmatpush.bf16.msra.mxu3 %v915_v21 }
  0x6f   : > { %504 = vmatpush.bf16.msra.mxu0 %v914_v22  ;;  %936 = vmatpush.bf16.msra.mxu1 %v914_v22 }
  0x70   : > { %937 = vmatpush.bf16.msra.mxu2 %v914_v22  ;;  %938 = vmatpush.bf16.msra.mxu3 %v914_v22 }
  0x73   : > { %505 = vmatpush.bf16.msra.mxu0 %v913_v23  ;;  %939 = vmatpush.bf16.msra.mxu1 %v913_v23 }
  0x74   : > { %940 = vmatpush.bf16.msra.mxu2 %v913_v23  ;;  %941 = vmatpush.bf16.msra.mxu3 %v913_v23 }
  0x77   : > { %506 = vmatpush.bf16.msra.mxu0 %v912_v24  ;;  %942 = vmatpush.bf16.msra.mxu1 %v912_v24 }
  0x78   : > { %943 = vmatpush.bf16.msra.mxu2 %v912_v24  ;;  %944 = vmatpush.bf16.msra.mxu3 %v912_v24 }
  0x7a   : > { %507 = vmatmul.bf16.vlgmr.msra.gmra.mxu0 %v904_v25  ;;  %517 = vmatmul.bf16.vlgmr.msra.gmra.mxu1 %v906_v26 }
  0x7b   : > { %527 = vmatmul.bf16.vlgmr.msra.gmra.mxu2 %v908_v27  ;;  %537 = vmatmul.bf16.vlgmr.msra.gmra.mxu3 %v910_v28 }
  0x8a   : > { %512 = vmatmul.bf16.gmra.mxu0 %v905_v29  ;;  %522 = vmatmul.bf16.gmra.mxu1 %v907_v30 }
  0x8b   : > { %532 = vmatmul.bf16.gmra.mxu2 %v909_v31  ;;  %542 = vmatmul.bf16.gmra.mxu3 %v911_v32 }
  0xf7   : > { %v508_v35 = vpop.f32.mrf.mxu0  ;;  %v518_v36 = vpop.f32.mrf.mxu1 }
  0xf8   : > { %v548_v37 = vadd.f32 %v508_v35, %v355_v33  ;;  %v552_v38 = vadd.f32 %v518_v36, %v359_v34 }
  0xfa   : > { %564 = vst [vmem:[#allocation2 + $0x30] sm:$0xff] %v548_v37 }
  0xfb   : > { %568 = vst [vmem:[#allocation2 + $0x50] sm:$0xff] %v552_v38 }
  0xfe   : > { %v528_v43 = vpop.f32.mrf.mxu2  ;;  %v538_v44 = vpop.f32.mrf.mxu3 }
  0xff   : > { %v556_v45 = vadd.f32 %v528_v43, %v363_v39  ;;  %v560_v46 = vadd.f32 %v538_v44, %v367_v40  ;;  %v510_v47 = vpop.f32.mrf.mxu0  ;;  %v520_v48 = vpop.f32.mrf.mxu1 }
 0x100   : > { %v549_v49 = vadd.f32 %v510_v47, %v356_v41  ;;  %v553_v50 = vadd.f32 %v520_v48, %v360_v42 }
 0x101   : > { %572 = vst [vmem:[#allocation2 + $0x40] sm:$0xff] %v556_v45 }
 0x102   : > { %576 = vst [vmem:[#allocation2 + $0x60] sm:$0xff] %v560_v46 }
 0x103   : > { %565 = vst [vmem:[#allocation2] sm:$0xff] %v549_v49 }
 0x104   : > { %569 = vst [vmem:[#allocation2 + $0x68] sm:$0xff] %v553_v50 }
 0x106   : > { %v530_v55 = vpop.f32.mrf.mxu2  ;;  %v540_v56 = vpop.f32.mrf.mxu3 }
 0x107   : > { %v557_v57 = vadd.f32 %v530_v55, %v364_v51  ;;  %v561_v58 = vadd.f32 %v540_v56, %v368_v52  ;;  %v513_v59 = vpop.f32.mrf.mxu0  ;;  %v523_v60 = vpop.f32.mrf.mxu1 }
 0x108   : > { %v550_v61 = vadd.f32 %v513_v59, %v357_v53  ;;  %v554_v62 = vadd.f32 %v523_v60, %v361_v54 }
 0x109   : > { %573 = vst [vmem:[#allocation2 + $0x20] sm:$0xff] %v557_v57 }
 0x10a   : > { %577 = vst [vmem:[#allocation2 + $0x70] sm:$0xff] %v561_v58 }
 0x10b   : > { %566 = vst [vmem:[#allocation2 + $0x58] sm:$0xff] %v550_v61 }
 0x10c   : > { %570 = vst [vmem:[#allocation2 + $0x8] sm:$0xff] %v554_v62 }
 0x10e   : > { %v533_v3 = vpop.f32.mrf.mxu2  ;;  %v543_v4 = vpop.f32.mrf.mxu3 }
 0x10f   : > { %v558_v5 = vadd.f32 %v533_v3, %v365_v63  ;;  %v562_v6 = vadd.f32 %v543_v4, %v369_v0  ;;  %v515_v7 = vpop.f32.mrf.mxu0  ;;  %v525_v8 = vpop.f32.mrf.mxu1 }
 0x110   : > { %v551_v9 = vadd.f32 %v515_v7, %v358_v1  ;;  %v555_v10 = vadd.f32 %v525_v8, %v362_v2 }
 0x111   : > { %574 = vst [vmem:[#allocation2 + $0x10] sm:$0xff] %v558_v5 }
 0x112   : > { %578 = vst [vmem:[#allocation2 + $0x78] sm:$0xff] %v562_v6 }
 0x113   : > { %567 = vst [vmem:[#allocation2 + $0x18] sm:$0xff] %v551_v9 }
 0x114   : > { %571 = vst [vmem:[#allocation2 + $0x48] sm:$0xff] %v555_v10 }
 0x116   : > { %v535_v13 = vpop.f32.mrf.mxu2  ;;  %v545_v14 = vpop.f32.mrf.mxu3  ;;  %583 = sbr.rel (%p897_p6) target bundleno = 305 (0x131), region = 81 }
 0x117   : > { %v559_v15 = vadd.f32 %v535_v13, %v366_v11  ;;  %v563_v16 = vadd.f32 %v545_v14, %v370_v12 }
 0x119   : > { %575 = vst [vmem:[#allocation2 + $0x38] sm:$0xff] %v559_v15 }
 0x11a   : > { %579 = vst [vmem:[#allocation2 + $0x28] sm:$0xff] %v563_v16 }
 0x11b   : > { %v584_v17 = vld [vmem:[#allocation2 + $0x30] sm:$0xff]  ;;  %v616_v18 = vld [vmem:[%s1303_s15] sm:$0xff]  ;;  %v617_v22 = vld [vmem:[%s1303_s15 + $0x8] sm:$0xff] }
 0x11c   : > { %v585_v19 = vld [vmem:[#allocation2] sm:$0xff]  ;;  %v600_v20 = vmax.f32 %v584_v17, 0.0  ;;  %vm632_vm0 = vcmp.ge.f32.partialorder %v616_v18, 0.5  ;;  %v586_v23 = vld [vmem:[#allocation2 + $0x58] sm:$0xff]  ;;  %v618_v24 = vld [vmem:[%s1303_s15 + $0x10] sm:$0xff]  ;;  %vm633_vm1 = vcmp.ge.f32.partialorder %v617_v22, 0.5 }
 0x11d   : > { %v601_v21 = vmax.f32 %v585_v19, 0.0  ;;  %v602_v25 = vmax.f32 %v586_v23, 0.0  ;;  %vm634_vm2 = vcmp.ge.f32.partialorder %v618_v24, 0.5  ;;  %v587_v26 = vld [vmem:[#allocation2 + $0x18] sm:$0xff]  ;;  %v588_v28 = vld [vmem:[#allocation2 + $0x50] sm:$0xff]  ;;  %v620_v32 = vld [vmem:[%s1303_s15 + $0x20] sm:$0xff] }
 0x11e   : > { %v619_v27 = vld [vmem:[%s1303_s15 + $0x18] sm:$0xff]  ;;  %v648_v29 = vmul.f32 2.0, %v600_v20  ;;  %v603_v31 = vmax.f32 %v587_v26, 0.0  ;;  %v589_v33 = vld [vmem:[#allocation2 + $0x68] sm:$0xff]  ;;  %v604_v35 = vmax.f32 %v588_v28, 0.0  ;;  %vm636_vm4 = vcmp.ge.f32.partialorder %v620_v32, 0.5 }
 0x11f   : > { %v649_v30 = vmul.f32 2.0, %v601_v21  ;;  %vm635_vm3 = vcmp.ge.f32.partialorder %v619_v27, 0.5  ;;  %v650_v34 = vmul.f32 2.0, %v602_v25  ;;  %v605_v36 = vmax.f32 %v589_v33, 0.0  ;;  %v621_v37 = vld [vmem:[%s1303_s15 + $0x28] sm:$0xff]  ;;  %v622_v42 = vld [vmem:[%s1303_s15 + $0x30] sm:$0xff] }
 0x120   : > { %v590_v38 = vld [vmem:[#allocation2 + $0x8] sm:$0xff]  ;;  %v664_v39 = vsel %vm632_vm0, %v648_v29, 0.0  ;;  %v651_v41 = vmul.f32 2.0, %v603_v31  ;;  %vm637_vm5 = vcmp.ge.f32.partialorder %v621_v37, 0.5  ;;  %v652_v45 = vmul.f32 2.0, %v604_v35  ;;  %v623_v48 = vld [vmem:[%s1303_s15 + $0x38] sm:$0xff] }
 0x121   : > { %v665_v40 = vsel %vm633_vm1, %v649_v30, 0.0  ;;  %v591_v43 = vld [vmem:[#allocation2 + $0x48] sm:$0xff]  ;;  %680 = vst [vmem:[%s1307_s5] sm:$0xff] %v664_v39  ;;  %v666_v44 = vsel %vm634_vm2, %v650_v34, 0.0  ;;  %v653_v46 = vmul.f32 2.0, %v605_v36  ;;  %v606_v47 = vmax.f32 %v590_v38, 0.0  ;;  %v592_v49 = vld [vmem:[#allocation2 + $0x40] sm:$0xff] }
 0x122   : > { %681 = vst [vmem:[%s1307_s5 + $0x8] sm:$0xff] %v665_v40  ;;  %v667_v50 = vsel %vm635_vm3, %v651_v41, 0.0  ;;  %vm638_vm6 = vcmp.ge.f32.partialorder %v622_v42, 0.5  ;;  %v607_v51 = vmax.f32 %v591_v43, 0.0  ;;  %vm639_vm7 = vcmp.ge.f32.partialorder %v623_v48, 0.5  ;;  %v624_v52 = vld [vmem:[%s1303_s15 + $0x40] sm:$0xff] }
 0x123   : > { %682 = vst [vmem:[%s1307_s5 + $0x10] sm:$0xff] %v666_v44  ;;  %v668_v53 = vsel %vm636_vm4, %v652_v45, 0.0  ;;  %v669_v54 = vsel %vm637_vm5, %v653_v46, 0.0  ;;  %v654_v55 = vmul.f32 2.0, %v606_v47  ;;  %v608_v56 = vmax.f32 %v592_v49, 0.0  ;;  %v593_v57 = vld [vmem:[#allocation2 + $0x20] sm:$0xff] }
 0x124   : > { %683 = vst [vmem:[%s1307_s5 + $0x18] sm:$0xff] %v667_v50  ;;  %v655_v58 = vmul.f32 2.0, %v607_v51  ;;  %vm640_vm8 = vcmp.ge.f32.partialorder %v624_v52, 0.5  ;;  %v609_v59 = vmax.f32 %v593_v57, 0.0  ;;  %v625_v60 = vld [vmem:[%s1303_s15 + $0x48] sm:$0xff]  ;;  %v594_v61 = vld [vmem:[#allocation2 + $0x10] sm:$0xff] }
 0x125   : > { %684 = vst [vmem:[%s1307_s5 + $0x20] sm:$0xff] %v668_v53  ;;  %v670_v62 = vsel %vm638_vm6, %v654_v55, 0.0  ;;  %v656_v63 = vmul.f32 2.0, %v608_v56  ;;  %vm641_vm9 = vcmp.ge.f32.partialorder %v625_v60, 0.5  ;;  %v610_v0 = vmax.f32 %v594_v61, 0.0  ;;  %v626_v1 = vld [vmem:[%s1303_s15 + $0x50] sm:$0xff] }
 0x126   : > { %685 = vst [vmem:[%s1307_s5 + $0x28] sm:$0xff] %v669_v54  ;;  %v671_v2 = vsel %vm639_vm7, %v655_v58, 0.0  ;;  %v657_v3 = vmul.f32 2.0, %v609_v59  ;;  %vm642_vm10 = vcmp.ge.f32.partialorder %v626_v1, 0.5  ;;  %v595_v4 = vld [vmem:[#allocation2 + $0x38] sm:$0xff]  ;;  %v596_v9 = vld [vmem:[#allocation2 + $0x60] sm:$0xff] }
 0x127   : > { %v627_v5 = vld [vmem:[%s1303_s15 + $0x58] sm:$0xff]  ;;  %686 = vst [vmem:[%s1307_s5 + $0x30] sm:$0xff] %v670_v62  ;;  %v672_v6 = vsel %vm640_vm8, %v656_v63, 0.0  ;;  %v658_v7 = vmul.f32 2.0, %v610_v0  ;;  %v611_v8 = vmax.f32 %v595_v4, 0.0  ;;  %v612_v11 = vmax.f32 %v596_v9, 0.0 }
 0x128   : > { %vm643_vm11 = vcmp.ge.f32.partialorder %v627_v5, 0.5  ;;  %687 = vst [vmem:[%s1307_s5 + $0x38] sm:$0xff] %v671_v2  ;;  %v673_v10 = vsel %vm641_vm9, %v657_v3, 0.0  ;;  %v628_v12 = vld [vmem:[%s1303_s15 + $0x60] sm:$0xff]  ;;  %v597_v13 = vld [vmem:[#allocation2 + $0x70] sm:$0xff]  ;;  %v629_v14 = vld [vmem:[%s1303_s15 + $0x68] sm:$0xff] }
 0x129   : > { %688 = vst [vmem:[%s1307_s5 + $0x40] sm:$0xff] %v672_v6  ;;  %v674_v15 = vsel %vm642_vm10, %v658_v7, 0.0  ;;  %v659_v16 = vmul.f32 2.0, %v611_v8  ;;  %vm644_vm12 = vcmp.ge.f32.partialorder %v628_v12, 0.5  ;;  %v613_v17 = vmax.f32 %v597_v13, 0.0  ;;  %v598_v18 = vld [vmem:[#allocation2 + $0x78] sm:$0xff] }
 0x12a   : > { %689 = vst [vmem:[%s1307_s5 + $0x48] sm:$0xff] %v673_v10  ;;  %v660_v19 = vmul.f32 2.0, %v612_v11  ;;  %vm645_vm13 = vcmp.ge.f32.partialorder %v629_v14, 0.5  ;;  %v614_v20 = vmax.f32 %v598_v18, 0.0  ;;  %v630_v21 = vld [vmem:[%s1303_s15 + $0x70] sm:$0xff]  ;;  %v599_v22 = vld [vmem:[#allocation2 + $0x28] sm:$0xff] }
 0x12b   : > { %690 = vst [vmem:[%s1307_s5 + $0x50] sm:$0xff] %v674_v15  ;;  %v675_v23 = vsel %vm643_vm11, %v659_v16, 0.0  ;;  %v661_v24 = vmul.f32 2.0, %v613_v17  ;;  %vm646_vm14 = vcmp.ge.f32.partialorder %v630_v21, 0.5  ;;  %v615_v25 = vmax.f32 %v599_v22, 0.0  ;;  %v631_v26 = vld [vmem:[%s1303_s15 + $0x78] sm:$0xff] }
 0x12c   : > { %691 = vst [vmem:[%s1307_s5 + $0x58] sm:$0xff] %v675_v23  ;;  %v676_v27 = vsel %vm644_vm12, %v660_v19, 0.0  ;;  %v662_v28 = vmul.f32 2.0, %v614_v20  ;;  %vm647_vm15 = vcmp.ge.f32.partialorder %v631_v26, 0.5 }
 0x12d   : > { %692 = vst [vmem:[%s1307_s5 + $0x60] sm:$0xff] %v676_v27  ;;  %v677_v29 = vsel %vm645_vm13, %v661_v24, 0.0  ;;  %v663_v30 = vmul.f32 2.0, %v615_v25 }
 0x12e   : > { %693 = vst [vmem:[%s1307_s5 + $0x68] sm:$0xff] %v677_v29  ;;  %v678_v31 = vsel %vm646_vm14, %v662_v28, 0.0 }
 0x12f   : > { %694 = vst [vmem:[%s1307_s5 + $0x70] sm:$0xff] %v678_v31  ;;  %v679_v32 = vsel %vm647_vm15, %v663_v30, 0.0 }
 0x130   : > { %695 = vst [vmem:[%s1307_s5 + $0x78] sm:$0xff] %v679_v32 }
 0x131 PF: > { %s920_s0 = sshll.u32 %s1133_s18, 7  ;;  %s709_s10 = sshll.u32 %s1307_s5, 4  ;;  %s710_s10 = int_to_ptr.vmem [resolvable:$true] %s709_s10 }
 0x132   : > { %s708_s9 = scalar_lea.hbm %s1426_s3, %s920_s0  ;;  %s1435_s22 = sand.u32 1, %s1113_s13  }
 0x133   : > { %s711_s11 = sshll.u32 %s708_s9, 4  ;;  %s697_s23 = scalar_lea.sflag [#allocation5], %s1435_s22  ;;  %s712_s11 = int_to_ptr.hbm [resolvable:$true] %s711_s11 }
 0x134   : > { %s1049_s27 = sshra.s32 %s712_s11, 4  ;;  %s1055_s18 = scalar_lea.hbm %s1426_s3, 256  ;;  %s1050_s27 = int_to_ptr.hbm [resolvable:$true] %s1049_s27 }
 0x135   : > { %s1051_s4 = scalar_lea.hbm %s1050_s27, 128  ;;  %p1056_p11 = scmp.lt.s32.totalorder %s1050_s27, %s1426_s3 }
 0x136   : > { %p1052_p8 = scmp.ne.s32.totalorder %s1050_s27, %s1051_s4  ;;  %p1057_p13 = scmp.lt.s32.totalorder %s1055_s18, %s1051_s4 }
 0x138   : > { %p1053_p9 = pnand %p1052_p8, %p1242_p7  ;;  %p1058_p0 = por %p1057_p13, %p1056_p11 }
 0x13a   : > { %p1054_p10 = pneg %p1053_p9 }
 0x13c   : > { %p1059_p1 = pnand %p1058_p0, %p1054_p10 }
 0x13e   : > { %1062 = shalt.err (!%p1059_p1)
}
 0x13f   : > { %s1148_s5 = smov 128   ;;  %s1149_s0 = smov 8  }
 0x140   : > { %945 = dma.vmem_to_hbm [thread:$0]  (%p1242_p7), %s710_s10, 2048, %s712_s11, %s697_s23, %s1148_s5, %s1148_s5, %s1149_s0  }
 0x141 PF: > { %p951_p2 = scmp.ge.s32.totalorder %s1145_s21, 2  ;;  %s726_s17 = sand.u32 1, %s1109_s12  }
 0x142   : > { %s727_s25 = scalar_lea.sflag [#allocation5], %s726_s17 }
 0x143   : > { %p948_p3 = pnand %p951_p2, %p1250_p12 }
 0x145   : > { %p949_p4 = pneg %p948_p3 }
 0x147   : > { %1104 = dma.done.wait (%p949_p4), %s727_s25, 2048  }
 0x148   : > { %1106 = vsyncadd (%p949_p4), %s727_s25, 4294965248  ;;  %s16_s21 = sadd.s32 1, %s1145_s21   ;;  %s1436_s30 = sld [smem:[#allocation7_spill]] }
 0x149   : > { %p13_p5 = scmp.ge.s32.totalorder %s16_s21, 6   ;;  %s1437_s12 = smov %s1113_s13 }
 0x14a   : > { %s1438_s13 = smov %s1117_s14  ;;  %s1439_s14 = smov %s1255_s7 }
 0x14b   : > { %s1440_s15 = smov %s1125_s16  ;;  %s1441_s16 = smov %s1258_s8 }
 0x14c   : > { %s1442_s17 = smov %s1137_s19  ;;  %s1443_s18 = smov %s1141_s20 }
 0x14d   : > { %s1444_s19 = smov %s1447_s24  ;;  %15 = sbr.rel (!%p13_p5) target bundleno = 8 (0x8), region = 127 }
 0x14e   : > { %s1445_s20 = smov %s1436_s30 }
 0x152   :  { %733 = vsyncpa [#allocation5], 1 }
 0x153   :  { %735 = vsyncpa [#allocation5 + $0x1], 1 }

</bundles_post_ra>
